<compile_context>
chip_gen: v6e
topology: v6e:2x2x1
jax: 0.10.0
libtpu: 0.0.40
codegen_flags: <defaults>
</compile_context>

<pallas_src>
import jax
import jax.numpy as jnp
from jax.experimental import pallas as pl
from jax.experimental.pallas import tpu as pltpu


def _round_up(x, m):
    return (x + m - 1) // m * m


# ----------------------------------------------------------------------------- kernel
def residual_block_kernel(x_ref, w1t_ref, b1_ref, w2t_ref, b2_ref, o_ref):
    """One batch tile: out = x + tanh(tanh(x @ W1^T + b1) @ W2^T + b2)."""
    x = x_ref[...]                                   # (tm, Hp), caller dtype
    x_f32 = x.astype(jnp.float32)                    # residual kept in f32
    xc = x.astype(w1t_ref.dtype)                     # MXU operand in compute dtype

    # Layer 1: MXU matmul, f32 accumulation; bias + tanh on VPU/EUP in f32.
    h1 = jnp.tanh(
        jnp.dot(xc, w1t_ref[...], preferred_element_type=jnp.float32) + b1_ref[...]
    )
    # Layer 2: cast back to the weights' dtype so bf16 weights hit the bf16 MXU path.
    h2 = jnp.tanh(
        jnp.dot(h1.astype(w2t_ref.dtype), w2t_ref[...],
                preferred_element_type=jnp.float32) + b2_ref[...]
    )
    o_ref[...] = (x_f32 + h2).astype(o_ref.dtype)    # store directly in x.dtype


# ------------------------------------------------------------------- parameter prep
def prepare_residual_block_params(w1, b1, w2, b2, *, compute_dtype=jnp.float32, lane=128):
    """One-time parameter prep (call at init, NOT per forward pass).

    PyTorch Linear convention: W is (out, in), b is (out,). Weights are transposed
    to (in, out), zero-padded so the feature axis is a multiple of `lane`
    (lane-dense; use lane=256 on v6e/v7x for large odd-128 hidden sizes to fill the
    2x256x256 MXU), and cast to the compute dtype. Biases stay f32.
    """
    H = int(jnp.asarray(w1).shape[0])
    Hp = _round_up(H, lane)
    pad = Hp - H

    def prep_w(w):
        wt = jnp.asarray(w, jnp.float32).T            # (in, out)
        wt = jnp.pad(wt, ((0, pad), (0, pad)))        # zero-pad features
        return wt.astype(compute_dtype)

    def prep_b(b):
        b2d = jnp.asarray(b, jnp.float32).reshape(1, H)
        return jnp.pad(b2d, ((0, 0), (0, pad)))       # f32 (1, Hp)

    return {"w1t": prep_w(w1), "b1": prep_b(b1), "w2t": prep_w(w2), "b2": prep_b(b2)}


# -------------------------------------------------------------------- VMEM budgeting
def _vmem_capacity_bytes():
    """Generation-aware VMEM capacity with a conservative fallback."""
    try:
        info = pltpu.get_tpu_info()
        cap = getattr(info, "vmem_capacity_bytes", None)
        if cap:
            return int(cap)
    except Exception:
        pass
    return 64 * 1024 * 1024        # safe on every generation (v7x per-TC size)


def _vmem_need_bytes(tm, Hp, x_itemsize, w_itemsize):
    act = 2 * 2 * tm * Hp * x_itemsize      # x + out tiles, double-buffered
    wts = 2 * Hp * Hp * w_itemsize          # W1^T + W2^T, Buffered(1)
    bias = 2 * Hp * 4                       # biases (f32), Buffered(1)
    f32_tmp = 3 * tm * Hp * 4               # live f32 intermediates: x_f32, h1, h2
    return act + wts + bias + f32_tmp


# ------------------------------------------------------------------------- wrapper
def residual_block(x, params, *, tile_m=None):
    """x: (B, H). params: output of prepare_residual_block_params()."""
    B, H = x.shape
    w1t, b1, w2t, b2 = params["w1t"], params["b1"], params["w2t"], params["b2"]
    Hp = w1t.shape[0]
    assert w1t.shape == (Hp, Hp) and w2t.shape == (Hp, Hp) and Hp >= H

    x_itemsize = jnp.dtype(x.dtype).itemsize
    w_itemsize = jnp.dtype(w1t.dtype).itemsize

    # --- batch-tile selection -------------------------------------------------
    # Largest tm (multiple of 128) that fits the VMEM budget; small hidden sizes
    # get big tiles (up to 2048 rows) since they are pipeline/HBM-bound.
    cap = _vmem_capacity_bytes()
    budget = int(0.85 * cap)                 # headroom for compiler scratch
    max_tm = tile_m if tile_m is not None else 2048
    assert max_tm % 128 == 0, "tile_m must be a multiple of 128"
    max_tm = min(max_tm, _round_up(B, 128))
    if B > 128:
        # Keep >= 2 grid steps so ("parallel",) can shard batch tiles across both
        # TensorCores on v7x (harmless single extra step on 1-TC generations).
        max_tm = min(max_tm, _round_up(pl.cdiv(B, 2), 128))
    max_tm = max(max_tm, 128)

    tm = 128
    for cand in range(max_tm, 127, -128):
        if int(_vmem_need_bytes(cand, Hp, x_itemsize, w_itemsize) * 1.3) <= budget:
            tm = cand
            break
    # TODO(synk): for hidden sizes where even tm=128 + two resident (Hp,Hp) weights
    # exceed VMEM (large Hp on v7x's 64 MiB), add an N-tiled layer-2 path (second
    # 'arbitrary' grid axis over W2^T column tiles with h1 cached in VMEM scratch).

    Bp = _round_up(B, tm)
    vmem_limit = int(min(budget,
                         max(_vmem_need_bytes(tm, Hp, x_itemsize, w_itemsize) * 1.3,
                             32 * 1024 * 1024)))

    # --- padding (single pass, only when needed) --------------------------------
    padded = (Bp != B) or (Hp != H)
    x_in = jnp.pad(x, ((0, Bp - B), (0, Hp - H))) if padded else x

    weight_spec = lambda: pl.BlockSpec((Hp, Hp), lambda i: (0, 0),
                                       pipeline_mode=pl.Buffered(1))
    bias_spec = lambda: pl.BlockSpec((1, Hp), lambda i: (0, 0),
                                     pipeline_mode=pl.Buffered(1))

    out = pl.pallas_call(
        residual_block_kernel,
        out_shape=jax.ShapeDtypeStruct((Bp, Hp), x.dtype),
        grid_spec=pltpu.PrefetchScalarGridSpec(
            num_scalar_prefetch=0,
            grid=(Bp // tm,),
            in_specs=[
                pl.BlockSpec((tm, Hp), lambda i: (i, 0)),   # x tile (lane-dense)
                weight_spec(),                              # W1^T (resident, 1 buf)
                bias_spec(),                                # b1 (f32)
                weight_spec(),                              # W2^T (resident, 1 buf)
                bias_spec(),                                # b2 (f32)
            ],
            out_specs=pl.BlockSpec((tm, Hp), lambda i: (i, 0)),
        ),
        compiler_params=pltpu.CompilerParams(
            dimension_semantics=("parallel",),   # batch tiles shard across TCs
            vmem_limit_bytes=vmem_limit,
        ),
        # Alias only when x_in is a fresh padded temporary (no defensive XLA copy).
        input_output_aliases={0: 0} if padded else {},
    )(x_in, w1t, b1, w2t, b2)

    if padded:
        out = out[:B, :H]
    return out


# ------------------------------------------------------------------------ reference
def residual_block_ref(x, w1, b1, w2, b2):
    """Pure-JAX reference matching the PyTorch module semantics."""
    h = jnp.tanh(x @ w1.T + b1)
    h = jnp.tanh(h @ w2.T + b2)
    return x + h


if __name__ == "__main__":
    hidden = 32

    key = jax.random.PRNGKey(0)
    kx, kw1, kb1, kw2, kb2, kx2 = jax.random.split(key, 6)

    # Deterministic synthetic parameters (PyTorch Linear shapes: W (out,in), b (out,)).
    bound = 1.0 / jnp.sqrt(hidden)
    w1 = jax.random.uniform(kw1, (hidden, hidden), jnp.float32, -bound, bound)
    b1 = jax.random.uniform(kb1, (hidden,), jnp.float32, -bound, bound)
    w2 = jax.random.uniform(kw2, (hidden, hidden), jnp.float32, -bound, bound)
    b2 = jax.random.uniform(kb2, (hidden,), jnp.float32, -bound, bound)

    run = jax.jit(residual_block)

    # f32 path, small batch (feature axis padded 32 -> 128 inside the wrapper).
    x_small = jax.random.normal(kx, (8, hidden), dtype=jnp.float32)
    params_f32 = prepare_residual_block_params(w1, b1, w2, b2, compute_dtype=jnp.float32)
    out = jax.block_until_ready(run(x_small, params_f32))
    ref = residual_block_ref(x_small, w1, b1, w2, b2)
    assert out.shape == x_small.shape and out.dtype == x_small.dtype
    assert jnp.allclose(out, ref, atol=1e-5, rtol=1e-5), "f32 mismatch vs reference"

    # f32 path, ragged batch -> multi-step grid (>=2 steps for megacore) with padding.
    x_big = jax.random.normal(kx2, (1040, hidden), dtype=jnp.float32)
    out_big = jax.block_until_ready(run(x_big, params_f32))
    ref_big = residual_block_ref(x_big, w1, b1, w2, b2)
    assert jnp.allclose(out_big, ref_big, atol=1e-5, rtol=1e-5), "f32 ragged-batch mismatch"

    # bf16 weights path: activations, residual and output stay f32 (x.dtype).
    params_bf16 = prepare_residual_block_params(w1, b1, w2, b2, compute_dtype=jnp.bfloat16)
    out_bf16 = jax.block_until_ready(run(x_small, params_bf16))
    assert out_bf16.dtype == jnp.float32
    assert jnp.allclose(out_bf16, ref, atol=5e-2, rtol=5e-2), "bf16 mismatch vs reference"

    print("KERNEL_OK")
</pallas_src>

<mosaic_0001>
module attributes {stable_mosaic.version = 11 : i64} {
  func.func @residual_block_kernel(%arg0: i32, %arg1: memref<128x128xf32, #tpu.memory_space<vmem>>, %arg2: memref<128x128xf32, #tpu.memory_space<vmem>>, %arg3: memref<1x128xf32, #tpu.memory_space<vmem>>, %arg4: memref<128x128xf32, #tpu.memory_space<vmem>>, %arg5: memref<1x128xf32, #tpu.memory_space<vmem>>, %arg6: memref<128x128xf32, #tpu.memory_space<vmem>>) attributes {dimension_semantics = [#tpu.dimension_semantics<parallel>], iteration_bounds = array<i64: 1>, scalar_prefetch = 0 : i64, scratch_operands = 0 : i64, tpu.core_type = #tpu.core_type<tc>, window_params = [{transform_indices = @transform_0, window_bounds = array<i64: 128, 128>}, {pipeline_mode = #tpu.pipeline_mode<synchronous>, transform_indices = @transform_1, window_bounds = array<i64: 128, 128>}, {pipeline_mode = #tpu.pipeline_mode<synchronous>, transform_indices = @transform_2, window_bounds = array<i64: 1, 128>}, {pipeline_mode = #tpu.pipeline_mode<synchronous>, transform_indices = @transform_3, window_bounds = array<i64: 128, 128>}, {pipeline_mode = #tpu.pipeline_mode<synchronous>, transform_indices = @transform_4, window_bounds = array<i64: 1, 128>}, {transform_indices = @transform_5, window_bounds = array<i64: 128, 128>}]} {
    %c0 = arith.constant 0 : index
    %c0_0 = arith.constant 0 : index
    %0 = vector.load %arg1[%c0, %c0_0] : memref<128x128xf32, #tpu.memory_space<vmem>>, vector<128x128xf32>
    %c0_1 = arith.constant 0 : index
    %c0_2 = arith.constant 0 : index
    %1 = vector.load %arg2[%c0_1, %c0_2] : memref<128x128xf32, #tpu.memory_space<vmem>>, vector<128x128xf32>
    %cst = arith.constant dense<0.000000e+00> : vector<128x128xf32>
    %2 = tpu.matmul %0, %1, %cst {dimension_numbers = #tpu.dot_dimension_numbers<[1], [0], [0], [1], [0, 0, 1, 1], [], []>} : vector<128x128xf32>, vector<128x128xf32>, vector<128x128xf32> -> vector<128x128xf32>
    %c0_3 = arith.constant 0 : index
    %c0_4 = arith.constant 0 : index
    %3 = vector.load %arg3[%c0_3, %c0_4] : memref<1x128xf32, #tpu.memory_space<vmem>>, vector<1x128xf32>
    %4 = vector.broadcast %3 : vector<1x128xf32> to vector<128x128xf32>
    %5 = arith.addf %2, %4 : vector<128x128xf32>
    %6 = math.tanh %5 : vector<128x128xf32>
    %c0_5 = arith.constant 0 : index
    %c0_6 = arith.constant 0 : index
    %7 = vector.load %arg4[%c0_5, %c0_6] : memref<128x128xf32, #tpu.memory_space<vmem>>, vector<128x128xf32>
    %cst_7 = arith.constant dense<0.000000e+00> : vector<128x128xf32>
    %8 = tpu.matmul %6, %7, %cst_7 {dimension_numbers = #tpu.dot_dimension_numbers<[1], [0], [0], [1], [0, 0, 1, 1], [], []>} : vector<128x128xf32>, vector<128x128xf32>, vector<128x128xf32> -> vector<128x128xf32>
    %c0_8 = arith.constant 0 : index
    %c0_9 = arith.constant 0 : index
    %9 = vector.load %arg5[%c0_8, %c0_9] : memref<1x128xf32, #tpu.memory_space<vmem>>, vector<1x128xf32>
    %10 = vector.broadcast %9 : vector<1x128xf32> to vector<128x128xf32>
    %11 = arith.addf %8, %10 : vector<128x128xf32>
    %12 = math.tanh %11 : vector<128x128xf32>
    %13 = arith.addf %0, %12 : vector<128x128xf32>
    %c0_10 = arith.constant 0 : index
    %c0_11 = arith.constant 0 : index
    %14 = vector.load %arg6[%c0_10, %c0_11] : memref<128x128xf32, #tpu.memory_space<vmem>>, vector<128x128xf32>
    tpu.vector_store %arg6[%c0_10, %c0_11], %13 {strides = array<i32>} : memref<128x128xf32, #tpu.memory_space<vmem>>, vector<128x128xf32>,
    return
  }
  func.func @transform_0(%arg0: i32) -> (i32, i32) {
    %c0_i32 = arith.constant 0 : i32
    %c0_i32_0 = arith.constant 0 : i32
    return %arg0, %c0_i32 : i32, i32
  }
  func.func @transform_1(%arg0: i32) -> (i32, i32) {
    %c0_i32 = arith.constant 0 : i32
    %c0_i32_0 = arith.constant 0 : i32
    %c0_i32_1 = arith.constant 0 : i32
    return %c0_i32, %c0_i32_0 : i32, i32
  }
  func.func @transform_2(%arg0: i32) -> (i32, i32) {
    %c0_i32 = arith.constant 0 : i32
    %c0_i32_0 = arith.constant 0 : i32
    %c0_i32_1 = arith.constant 0 : i32
    return %c0_i32, %c0_i32_0 : i32, i32
  }
  func.func @transform_3(%arg0: i32) -> (i32, i32) {
    %c0_i32 = arith.constant 0 : i32
    %c0_i32_0 = arith.constant 0 : i32
    %c0_i32_1 = arith.constant 0 : i32
    return %c0_i32, %c0_i32_0 : i32, i32
  }
  func.func @transform_4(%arg0: i32) -> (i32, i32) {
    %c0_i32 = arith.constant 0 : i32
    %c0_i32_0 = arith.constant 0 : i32
    %c0_i32_1 = arith.constant 0 : i32
    return %c0_i32, %c0_i32_0 : i32, i32
  }
  func.func @transform_5(%arg0: i32) -> (i32, i32) {
    %c0_i32 = arith.constant 0 : i32
    %c0_i32_0 = arith.constant 0 : i32
    return %arg0, %c0_i32 : i32, i32
  }
}

</mosaic_0001>

<bundles_post_ra>
// kernel: residual_block.1
= control target key start
LH: loop header
LB: loop body
LE: loop exit
PB: predicated region body
PF: predicated region fallthrough
CT: control target
= control target key end

     0   :  { %10 = vsyncpa [#allocation3], 0  ;;  %s722_s18 = smov [#allocation2]   ;;  %s990_s0 = inlined_call_operand.vmem [shape: f32[128,128], index: 0, kind: input, shape index: {}, may-alias: {0,5}]   ;;  %s991_s1 = inlined_call_operand.vmem [shape: f32[128,128], index: 1, kind: input, shape index: {}]   ;;  %s992_s2 = inlined_call_operand.vmem [shape: f32[1,128], index: 2, kind: input, shape index: {}]   ;;  %s993_s3 = inlined_call_operand.hbm [shape: f32[128,128], index: 3, kind: input, shape index: {}]   ;;  %s994_s4 = inlined_call_operand.vmem [shape: f32[1,128], index: 4, kind: input, shape index: {}]   ;;  %s995_s5 = inlined_call_operand.vmem [shape: f32[128,128], index: 5, kind: output, shape index: {}, may-alias: {0,5}]  }
   0x1   :  { %s22_s19 = sshll.u32 %s722_s18, 4  ;;  %s23_s19 = int_to_ptr.vmem [resolvable:$true] %s22_s19 }
   0x2   :  { %s708_s20 = scalar_lea.vmem %s23_s19, 2048  ;;  %p713_p1 = scmp.lt.s32.totalorder %s23_s19, %s23_s19 }
   0x3   :  { %p709_p0 = scmp.ne.s32.totalorder %s23_s19, %s708_s20  ;;  %p714_p2 = scmp.lt.s32.totalorder %s708_s20, %s708_s20 }
   0x5   :  { %p715_p3 = por %p714_p2, %p713_p1 }
   0x7   :  { %p716_p4 = pnand %p715_p3, %p709_p0 }
   0x9   :  { %719 = shalt.err (!%p716_p4)
}
   0xa   :  { %s723_s21 = smov 128   ;;  %s724_s22 = smov 8  }
   0xb   :  { %28 = dma.hbm_to_vmem [thread:$0]  %s993_s3, 2048, %s23_s19, [#allocation3], %s723_s21, %s723_s21, %s724_s22  }
   0xc   :  { %720 = dma.done.wait [#allocation3], 2048  }
   0xd   :  { %721 = vsyncadd [#allocation3], 4294965248  ;;  %v65_v0 = vld [vmem:[%s991_s1 + $0x78] sm:$0xff]  ;;  %v64_v1 = vld [vmem:[%s991_s1 + $0x70] sm:$0xff] }
   0xe   :  { %521 = vmatprep.subr.mxu0 %v65_v0  ;;  %v63_v2 = vld [vmem:[%s991_s1 + $0x68] sm:$0xff]  ;;  %v62_v3 = vld [vmem:[%s991_s1 + $0x60] sm:$0xff]  ;;  %v61_v5 = vld [vmem:[%s991_s1 + $0x58] sm:$0xff] }
   0xf   :  { %522 = vmatpush3.msra.mxu0 %v65_v0  ;;  %v773_v4 = vld [vmem:[%s990_s0] sm:$0xff]  ;;  %v60_v6 = vld [vmem:[%s991_s1 + $0x50] sm:$0xff]  ;;  %v59_v7 = vld [vmem:[%s991_s1 + $0x48] sm:$0xff] }
  0x10   :  { %523 = vmatprep.subr.mxu0 %v64_v1  ;;  %553 = vmatprep.mubr.f32.mxu0 %v773_v4  ;;  %v249_v8 = vld [vmem:[#allocation2 + $0x78] sm:$0xff]  ;;  %v248_v9 = vld [vmem:[#allocation2 + $0x70] sm:$0xff]  ;;  %v58_v10 = vld [vmem:[%s991_s1 + $0x40] sm:$0xff] }
  0x11   :  { %524 = vmatpush3.msra.mxu0 %v64_v1  ;;  %577 = vmatprep.subr.mxu1 %v249_v8  ;;  %v247_v11 = vld [vmem:[#allocation2 + $0x68] sm:$0xff]  ;;  %v57_v12 = vld [vmem:[%s991_s1 + $0x38] sm:$0xff]  ;;  %v246_v13 = vld [vmem:[#allocation2 + $0x60] sm:$0xff] }
  0x12   :  { %525 = vmatprep.subr.mxu0 %v63_v2  ;;  %578 = vmatpush3.msra.mxu1 %v249_v8  ;;  %v56_v14 = vld [vmem:[%s991_s1 + $0x30] sm:$0xff]  ;;  %v245_v15 = vld [vmem:[#allocation2 + $0x58] sm:$0xff]  ;;  %v55_v16 = vld [vmem:[%s991_s1 + $0x28] sm:$0xff] }
  0x13   :  { %526 = vmatpush3.msra.mxu0 %v63_v2  ;;  %579 = vmatprep.subr.mxu1 %v248_v9  ;;  %v244_v17 = vld [vmem:[#allocation2 + $0x50] sm:$0xff]  ;;  %v54_v18 = vld [vmem:[%s991_s1 + $0x20] sm:$0xff]  ;;  %v53_v19 = vld [vmem:[%s991_s1 + $0x18] sm:$0xff] }
  0x14   :  { %527 = vmatprep.subr.mxu0 %v62_v3  ;;  %580 = vmatpush3.msra.mxu1 %v248_v9  ;;  %v52_v20 = vld [vmem:[%s991_s1 + $0x10] sm:$0xff]  ;;  %v51_v21 = vld [vmem:[%s991_s1 + $0x8] sm:$0xff]  ;;  %v50_v22 = vld [vmem:[%s991_s1] sm:$0xff] }
  0x15   :  { %528 = vmatpush3.msra.mxu0 %v62_v3  ;;  %581 = vmatprep.subr.mxu1 %v247_v11  ;;  %v815_v23 = vld [vmem:[%s990_s0 + $0x8] sm:$0xff]  ;;  %v820_v24 = vld [vmem:[%s990_s0 + $0x10] sm:$0xff]  ;;  %v827_v25 = vld [vmem:[%s990_s0 + $0x18] sm:$0xff] }
  0x16   :  { %529 = vmatprep.subr.mxu0 %v61_v5  ;;  %582 = vmatpush3.msra.mxu1 %v247_v11  ;;  %v832_v26 = vld [vmem:[%s990_s0 + $0x20] sm:$0xff]  ;;  %v839_v27 = vld [vmem:[%s990_s0 + $0x28] sm:$0xff]  ;;  %v844_v28 = vld [vmem:[%s990_s0 + $0x30] sm:$0xff] }
  0x17   :  { %530 = vmatpush3.msra.mxu0 %v61_v5  ;;  %583 = vmatprep.subr.mxu1 %v246_v13  ;;  %v851_v29 = vld [vmem:[%s990_s0 + $0x38] sm:$0xff]  ;;  %v856_v30 = vld [vmem:[%s990_s0 + $0x40] sm:$0xff]  ;;  %v863_v31 = vld [vmem:[%s990_s0 + $0x48] sm:$0xff] }
  0x18   :  { %531 = vmatprep.subr.mxu0 %v60_v6  ;;  %584 = vmatpush3.msra.mxu1 %v246_v13  ;;  %v868_v32 = vld [vmem:[%s990_s0 + $0x50] sm:$0xff]  ;;  %v875_v33 = vld [vmem:[%s990_s0 + $0x58] sm:$0xff]  ;;  %v880_v34 = vld [vmem:[%s990_s0 + $0x60] sm:$0xff] }
  0x19   :  { %532 = vmatpush3.msra.mxu0 %v60_v6  ;;  %585 = vmatprep.subr.mxu1 %v245_v15  ;;  %v887_v35 = vld [vmem:[%s990_s0 + $0x68] sm:$0xff]  ;;  %v892_v36 = vld [vmem:[%s990_s0 + $0x70] sm:$0xff]  ;;  %v899_v37 = vld [vmem:[%s990_s0 + $0x78] sm:$0xff] }
  0x1a   :  { %533 = vmatprep.subr.mxu0 %v59_v7  ;;  %586 = vmatpush3.msra.mxu1 %v245_v15  ;;  %v243_v38 = vld [vmem:[#allocation2 + $0x48] sm:$0xff]  ;;  %v242_v39 = vld [vmem:[#allocation2 + $0x40] sm:$0xff]  ;;  %v241_v40 = vld [vmem:[#allocation2 + $0x38] sm:$0xff] }
  0x1b   :  { %534 = vmatpush3.msra.mxu0 %v59_v7  ;;  %587 = vmatprep.subr.mxu1 %v244_v17  ;;  %v240_v41 = vld [vmem:[#allocation2 + $0x30] sm:$0xff]  ;;  %v239_v42 = vld [vmem:[#allocation2 + $0x28] sm:$0xff]  ;;  %v238_v43 = vld [vmem:[#allocation2 + $0x20] sm:$0xff] }
  0x1c   :  { %535 = vmatprep.subr.mxu0 %v58_v10  ;;  %588 = vmatpush3.msra.mxu1 %v244_v17  ;;  %v237_v44 = vld [vmem:[#allocation2 + $0x18] sm:$0xff]  ;;  %v236_v45 = vld [vmem:[#allocation2 + $0x10] sm:$0xff]  ;;  %v235_v46 = vld [vmem:[#allocation2 + $0x8] sm:$0xff] }
  0x1d   :  { %536 = vmatpush3.msra.mxu0 %v58_v10  ;;  %589 = vmatprep.subr.mxu1 %v243_v38  ;;  %v234_v47 = vld [vmem:[#allocation2] sm:$0xff] }
  0x1e   :  { %537 = vmatprep.subr.mxu0 %v57_v12  ;;  %590 = vmatpush3.msra.mxu1 %v243_v38  ;;  %v455_v48 = vld [vmem:[%s992_s2] ss:$0 sm:$0xff] }
  0x1f   :  { %538 = vmatpush3.msra.mxu0 %v57_v12  ;;  %591 = vmatprep.subr.mxu1 %v242_v39 }
  0x20   :  { %539 = vmatprep.subr.mxu0 %v56_v14  ;;  %592 = vmatpush3.msra.mxu1 %v242_v39 }
  0x21   :  { %540 = vmatpush3.msra.mxu0 %v56_v14  ;;  %593 = vmatprep.subr.mxu1 %v241_v40 }
  0x22   :  { %541 = vmatprep.subr.mxu0 %v55_v16  ;;  %594 = vmatpush3.msra.mxu1 %v241_v40 }
  0x23   :  { %542 = vmatpush3.msra.mxu0 %v55_v16  ;;  %595 = vmatprep.subr.mxu1 %v240_v41 }
  0x24   :  { %543 = vmatprep.subr.mxu0 %v54_v18  ;;  %596 = vmatpush3.msra.mxu1 %v240_v41 }
  0x25   :  { %544 = vmatpush3.msra.mxu0 %v54_v18  ;;  %597 = vmatprep.subr.mxu1 %v239_v42 }
  0x26   :  { %545 = vmatprep.subr.mxu0 %v53_v19  ;;  %598 = vmatpush3.msra.mxu1 %v239_v42 }
  0x27   :  { %546 = vmatpush3.msra.mxu0 %v53_v19  ;;  %599 = vmatprep.subr.mxu1 %v238_v43 }
  0x28   :  { %547 = vmatprep.subr.mxu0 %v52_v20  ;;  %600 = vmatpush3.msra.mxu1 %v238_v43 }
  0x29   :  { %548 = vmatpush3.msra.mxu0 %v52_v20  ;;  %601 = vmatprep.subr.mxu1 %v237_v44 }
  0x2a   :  { %549 = vmatprep.subr.mxu0 %v51_v21  ;;  %602 = vmatpush3.msra.mxu1 %v237_v44 }
  0x2b   :  { %550 = vmatpush3.msra.mxu0 %v51_v21  ;;  %603 = vmatprep.subr.mxu1 %v236_v45 }
  0x2c   :  { %551 = vmatprep.subr.mxu0 %v50_v22  ;;  %604 = vmatpush3.msra.mxu1 %v236_v45 }
  0x2d   :  { %552 = vmatpush3.msra.mxu0 %v50_v22  ;;  %605 = vmatprep.subr.mxu1 %v235_v46 }
  0x2e   :  { %554 = vmatmul.mubr.f32.vlgmr.msra.gmra.mxu0 %v815_v23  ;;  %606 = vmatpush3.msra.mxu1 %v235_v46 }
  0x2f   :  { %556 = vmatprep.mubr.f32.mxu0 %v820_v24  ;;  %607 = vmatprep.subr.mxu1 %v234_v47 }
  0x30   :  { %608 = vmatpush3.msra.mxu1 %v234_v47 }
  0x32   :  { %557 = vmatmul.mubr.f32.gmra.mxu0 %v827_v25 }
  0x33   :  { %559 = vmatprep.mubr.f32.mxu0 %v832_v26 }
  0x36   :  { %560 = vmatmul.mubr.f32.gmra.mxu0 %v839_v27 }
  0x37   :  { %562 = vmatprep.mubr.f32.mxu0 %v844_v28 }
  0x3a   :  { %563 = vmatmul.mubr.f32.gmra.mxu0 %v851_v29 }
  0x3b   :  { %565 = vmatprep.mubr.f32.mxu0 %v856_v30 }
  0x3e   :  { %566 = vmatmul.mubr.f32.gmra.mxu0 %v863_v31 }
  0x3f   :  { %568 = vmatprep.mubr.f32.mxu0 %v868_v32 }
  0x42   :  { %569 = vmatmul.mubr.f32.gmra.mxu0 %v875_v33 }
  0x43   :  { %571 = vmatprep.mubr.f32.mxu0 %v880_v34 }
  0x46   :  { %572 = vmatmul.mubr.f32.gmra.mxu0 %v887_v35 }
  0x47   :  { %574 = vmatprep.mubr.f32.mxu0 %v892_v36 }
  0x4a   :  { %575 = vmatmul.mubr.f32.gmra.mxu0 %v899_v37 }
  0xee   :  { %v555_v49 = vpop.f32.mrf.mxu0 }
  0xef   :  { %v145_v50 = vadd.f32 %v555_v49, %v455_v48 }
  0xf0   :  { %v139_v51 = vpop.f32.mrf.mxu0 }
  0xf1   :  { %v140_v52 = vadd.f32 %v455_v48, %v139_v51 }
  0xf2   :  { %v558_v53 = vpop.f32.mrf.mxu0 }
  0xf3   :  { %636 = vtanh.f32 %v140_v52  ;;  %v155_v54 = vadd.f32 %v558_v53, %v455_v48 }
  0xf4   :  { %638 = vtanh.f32 %v145_v50  ;;  %v149_v55 = vpop.f32.mrf.mxu0 }
  0xf5   :  { %v150_v56 = vadd.f32 %v455_v48, %v149_v55 }
  0xf6   :  { %v561_v57 = vpop.f32.mrf.mxu0 }
  0xf7   :  { %640 = vtanh.f32 %v150_v56  ;;  %v165_v58 = vadd.f32 %v561_v57, %v455_v48 }
  0xf8   :  { %642 = vtanh.f32 %v155_v54  ;;  %v159_v59 = vpop.f32.mrf.mxu0 }
  0xf9   :  { %v160_v60 = vadd.f32 %v455_v48, %v159_v59 }
  0xfa   :  { %v564_v61 = vpop.f32.mrf.mxu0 }
  0xfb   :  { %644 = vtanh.f32 %v160_v60  ;;  %v175_v62 = vadd.f32 %v564_v61, %v455_v48 }
  0xfc   :  { %646 = vtanh.f32 %v165_v58  ;;  %v169_v63 = vpop.f32.mrf.mxu0 }
  0xfd   :  { %v170_v0 = vadd.f32 %v455_v48, %v169_v63 }
  0xfe   :  { %v567_v1 = vpop.f32.mrf.mxu0 }
  0xff   :  { %648 = vtanh.f32 %v170_v0  ;;  %v185_v3 = vadd.f32 %v567_v1, %v455_v48 }
 0x100   :  { %v637_v2 = vpop.eup %636  ;;  %650 = vtanh.f32 %v175_v62  ;;  %v179_v5 = vpop.f32.mrf.mxu0 }
 0x101   :  { %v639_v6 = vpop.eup %638  ;;  %v180_v7 = vadd.f32 %v455_v48, %v179_v5  ;;  %609 = vmatprep.mubr.f32.mxu1 %v637_v2 }
 0x102   :  { %v570_v8 = vpop.f32.mrf.mxu0  ;;  %610 = vmatmul.mubr.f32.vlgmr.msra.gmra.mxu1 %v639_v6 }
 0x103   :  { %652 = vtanh.f32 %v180_v7  ;;  %v195_v10 = vadd.f32 %v570_v8, %v455_v48 }
 0x104   :  { %v641_v9 = vpop.eup %640  ;;  %654 = vtanh.f32 %v185_v3  ;;  %v189_v11 = vpop.f32.mrf.mxu0 }
 0x105   :  { %v643_v12 = vpop.eup %642  ;;  %v190_v13 = vadd.f32 %v455_v48, %v189_v11  ;;  %612 = vmatprep.mubr.f32.mxu1 %v641_v9 }
 0x106   :  { %v573_v14 = vpop.f32.mrf.mxu0  ;;  %613 = vmatmul.mubr.f32.gmra.mxu1 %v643_v12 }
 0x107   :  { %656 = vtanh.f32 %v190_v13  ;;  %v205_v16 = vadd.f32 %v573_v14, %v455_v48 }
 0x108   :  { %v645_v15 = vpop.eup %644  ;;  %658 = vtanh.f32 %v195_v10  ;;  %v199_v17 = vpop.f32.mrf.mxu0 }
 0x109   :  { %v647_v18 = vpop.eup %646  ;;  %v200_v19 = vadd.f32 %v455_v48, %v199_v17  ;;  %615 = vmatprep.mubr.f32.mxu1 %v645_v15 }
 0x10a   :  { %v576_v20 = vpop.f32.mrf.mxu0  ;;  %616 = vmatmul.mubr.f32.gmra.mxu1 %v647_v18 }
 0x10b   :  { %660 = vtanh.f32 %v200_v19  ;;  %v215_v22 = vadd.f32 %v576_v20, %v455_v48 }
 0x10c   :  { %v649_v21 = vpop.eup %648  ;;  %662 = vtanh.f32 %v205_v16  ;;  %v209_v38 = vpop.f32.mrf.mxu0 }
 0x10d   :  { %v651_v39 = vpop.eup %650  ;;  %v210_v40 = vadd.f32 %v455_v48, %v209_v38  ;;  %618 = vmatprep.mubr.f32.mxu1 %v649_v21  ;;  %v908_v48 = vld [vmem:[%s994_s4] ss:$0 sm:$0xff] }
 0x10e   :  { %619 = vmatmul.mubr.f32.gmra.mxu1 %v651_v39 }
 0x10f   :  { %664 = vtanh.f32 %v210_v40 }
 0x110   :  { %v653_v41 = vpop.eup %652  ;;  %666 = vtanh.f32 %v215_v22 }
 0x111   :  { %v655_v42 = vpop.eup %654  ;;  %621 = vmatprep.mubr.f32.mxu1 %v653_v41 }
 0x112   :  { %622 = vmatmul.mubr.f32.gmra.mxu1 %v655_v42 }
 0x114   :  { %v657_v43 = vpop.eup %656 }
 0x115   :  { %v659_v44 = vpop.eup %658  ;;  %624 = vmatprep.mubr.f32.mxu1 %v657_v43 }
 0x116   :  { %625 = vmatmul.mubr.f32.gmra.mxu1 %v659_v44 }
 0x118   :  { %v661_v45 = vpop.eup %660 }
 0x119   :  { %v663_v46 = vpop.eup %662  ;;  %627 = vmatprep.mubr.f32.mxu1 %v661_v45 }
 0x11a   :  { %628 = vmatmul.mubr.f32.gmra.mxu1 %v663_v46 }
 0x11c   :  { %v665_v47 = vpop.eup %664 }
 0x11d   :  { %v667_v49 = vpop.eup %666  ;;  %630 = vmatprep.mubr.f32.mxu1 %v665_v47 }
 0x11e   :  { %631 = vmatmul.mubr.f32.gmra.mxu1 %v667_v49 }
 0x1c2   :  { %v611_v50 = vpop.f32.mrf.mxu1 }
 0x1c3   :  { %v329_v51 = vadd.f32 %v611_v50, %v908_v48 }
 0x1c4   :  { %v323_v52 = vpop.f32.mrf.mxu1 }
 0x1c5   :  { %668 = vtanh.f32 %v329_v51  ;;  %v324_v53 = vadd.f32 %v908_v48, %v323_v52 }
 0x1c6   :  { %v614_v54 = vpop.f32.mrf.mxu1 }
 0x1c7   :  { %670 = vtanh.f32 %v324_v53  ;;  %v339_v55 = vadd.f32 %v614_v54, %v908_v48 }
 0x1c8   :  { %v333_v56 = vpop.f32.mrf.mxu1 }
 0x1c9   :  { %672 = vtanh.f32 %v339_v55  ;;  %v334_v57 = vadd.f32 %v908_v48, %v333_v56 }
 0x1ca   :  { %v617_v58 = vpop.f32.mrf.mxu1 }
 0x1cb   :  { %674 = vtanh.f32 %v334_v57  ;;  %v349_v59 = vadd.f32 %v617_v58, %v908_v48 }
 0x1cc   :  { %v343_v60 = vpop.f32.mrf.mxu1 }
 0x1cd   :  { %676 = vtanh.f32 %v349_v59  ;;  %v344_v61 = vadd.f32 %v908_v48, %v343_v60 }
 0x1ce   :  { %v620_v62 = vpop.f32.mrf.mxu1 }
 0x1cf   :  { %678 = vtanh.f32 %v344_v61  ;;  %v359_v63 = vadd.f32 %v620_v62, %v908_v48 }
 0x1d0   :  { %v353_v0 = vpop.f32.mrf.mxu1 }
 0x1d1   :  { %680 = vtanh.f32 %v359_v63  ;;  %v354_v1 = vadd.f32 %v908_v48, %v353_v0 }
 0x1d2   :  { %v669_v2 = vpop.eup %668  ;;  %v623_v3 = vpop.f32.mrf.mxu1 }
 0x1d3   :  { %v419_v5 = vadd.f32 %v669_v2, %v815_v23  ;;  %682 = vtanh.f32 %v354_v1  ;;  %v369_v6 = vadd.f32 %v623_v3, %v908_v48 }
 0x1d4   :  { %v671_v7 = vpop.eup %670  ;;  %v363_v8 = vpop.f32.mrf.mxu1 }
 0x1d5   :  { %435 = vst [vmem:[%s995_s5 + $0x8] sm:$0xff] %v419_v5  ;;  %v418_v9 = vadd.f32 %v671_v7, %v773_v4  ;;  %684 = vtanh.f32 %v369_v6  ;;  %v364_v10 = vadd.f32 %v908_v48, %v363_v8 }
 0x1d6   :  { %v673_v11 = vpop.eup %672  ;;  %v626_v12 = vpop.f32.mrf.mxu1 }
 0x1d7   :  { %434 = vst [vmem:[%s995_s5] sm:$0xff] %v418_v9  ;;  %v421_v23 = vadd.f32 %v673_v11, %v827_v25  ;;  %686 = vtanh.f32 %v364_v10  ;;  %v379_v13 = vadd.f32 %v626_v12, %v908_v48 }
 0x1d8   :  { %v675_v14 = vpop.eup %674  ;;  %v373_v15 = vpop.f32.mrf.mxu1 }
 0x1d9   :  { %437 = vst [vmem:[%s995_s5 + $0x18] sm:$0xff] %v421_v23  ;;  %v420_v4 = vadd.f32 %v675_v14, %v820_v24  ;;  %688 = vtanh.f32 %v379_v13  ;;  %v374_v16 = vadd.f32 %v908_v48, %v373_v15 }
 0x1da   :  { %v677_v17 = vpop.eup %676  ;;  %v629_v18 = vpop.f32.mrf.mxu1 }
 0x1db   :  { %436 = vst [vmem:[%s995_s5 + $0x10] sm:$0xff] %v420_v4  ;;  %v423_v25 = vadd.f32 %v677_v17, %v839_v27  ;;  %690 = vtanh.f32 %v374_v16  ;;  %v389_v19 = vadd.f32 %v629_v18, %v908_v48 }
 0x1dc   :  { %v679_v20 = vpop.eup %678  ;;  %v383_v21 = vpop.f32.mrf.mxu1 }
 0x1dd   :  { %439 = vst [vmem:[%s995_s5 + $0x28] sm:$0xff] %v423_v25  ;;  %v422_v24 = vadd.f32 %v679_v20, %v832_v26  ;;  %692 = vtanh.f32 %v389_v19  ;;  %v384_v22 = vadd.f32 %v908_v48, %v383_v21 }
 0x1de   :  { %v681_v38 = vpop.eup %680  ;;  %v632_v39 = vpop.f32.mrf.mxu1 }
 0x1df   :  { %438 = vst [vmem:[%s995_s5 + $0x20] sm:$0xff] %v422_v24  ;;  %v425_v27 = vadd.f32 %v681_v38, %v851_v29  ;;  %694 = vtanh.f32 %v384_v22  ;;  %v399_v40 = vadd.f32 %v632_v39, %v908_v48 }
 0x1e0   :  { %v683_v41 = vpop.eup %682  ;;  %v393_v42 = vpop.f32.mrf.mxu1 }
 0x1e1   :  { %441 = vst [vmem:[%s995_s5 + $0x38] sm:$0xff] %v425_v27  ;;  %v424_v26 = vadd.f32 %v683_v41, %v844_v28  ;;  %696 = vtanh.f32 %v399_v40  ;;  %v394_v43 = vadd.f32 %v908_v48, %v393_v42 }
 0x1e2   :  { %v685_v44 = vpop.eup %684 }
 0x1e3   :  { %440 = vst [vmem:[%s995_s5 + $0x30] sm:$0xff] %v424_v26  ;;  %v427_v29 = vadd.f32 %v685_v44, %v863_v31  ;;  %698 = vtanh.f32 %v394_v43 }
 0x1e4   :  { %v687_v45 = vpop.eup %686 }
 0x1e5   :  { %443 = vst [vmem:[%s995_s5 + $0x48] sm:$0xff] %v427_v29  ;;  %v426_v46 = vadd.f32 %v687_v45, %v856_v30 }
 0x1e6   :  { %v689_v47 = vpop.eup %688 }
 0x1e7   :  { %442 = vst [vmem:[%s995_s5 + $0x40] sm:$0xff] %v426_v46  ;;  %v429_v28 = vadd.f32 %v689_v47, %v875_v33 }
 0x1e8   :  { %v691_v49 = vpop.eup %690 }
 0x1e9   :  { %445 = vst [vmem:[%s995_s5 + $0x58] sm:$0xff] %v429_v28  ;;  %v428_v31 = vadd.f32 %v691_v49, %v868_v32 }
 0x1ea   :  { %v693_v48 = vpop.eup %692 }
 0x1eb   :  { %444 = vst [vmem:[%s995_s5 + $0x50] sm:$0xff] %v428_v31  ;;  %v431_v30 = vadd.f32 %v693_v48, %v887_v35 }
 0x1ec   :  { %v695_v50 = vpop.eup %694 }
 0x1ed   :  { %447 = vst [vmem:[%s995_s5 + $0x68] sm:$0xff] %v431_v30  ;;  %v430_v33 = vadd.f32 %v695_v50, %v880_v34 }
 0x1ee   :  { %v697_v51 = vpop.eup %696 }
 0x1ef   :  { %446 = vst [vmem:[%s995_s5 + $0x60] sm:$0xff] %v430_v33  ;;  %v433_v32 = vadd.f32 %v697_v51, %v899_v37 }
 0x1f0   :  { %v699_v52 = vpop.eup %698 }
 0x1f1   :  { %449 = vst [vmem:[%s995_s5 + $0x78] sm:$0xff] %v433_v32  ;;  %v432_v35 = vadd.f32 %v699_v52, %v892_v36 }
 0x1f3   :  { %448 = vst [vmem:[%s995_s5 + $0x70] sm:$0xff] %v432_v35 }
 0x1f4   :  { %454 = vsyncpa [#allocation3], 1 }

</bundles_post_ra>
